<compile_context>
chip_gen: v6e
topology: v6e:2x2x1
jax: 0.10.0
libtpu: 0.0.40
codegen_flags: <defaults>
</compile_context>

<pallas_src>
import functools

import jax
import jax.numpy as jnp
from jax import lax
from jax.experimental import pallas as pl
from jax.experimental.pallas import tpu as pltpu

_MXU_DTYPE = jnp.bfloat16     # MXU operand dtype (single-pass on v5e/v6e/v7x)
_STORE_DTYPE = jnp.bfloat16   # HBM/VMEM storage dtype for h / hn


# ----------------------------------------------------------------------------
# Sizing helpers
# ----------------------------------------------------------------------------
def _round_up(x, m):
    return ((x + m - 1) // m) * m


def _vmem_capacity_bytes():
    """Physical VMEM per TensorCore (128 MiB v5e/v6e, 64 MiB v7x)."""
    try:
        return int(pltpu.get_tpu_info().vmem_capacity_bytes)
    except Exception:  # not on TPU / API surface changed: be conservative
        return 64 << 20


def _choose_tiles(n):
    """Pick (padded N, row tile tm, key tile tk), generation-aware."""
    cap = _vmem_capacity_bytes()
    # 128 MiB parts (v5e/v6e) take a wider key tile; 64 MiB (v7x) stays at 256.
    tk = 512 if cap >= (96 << 20) else 256
    tm = 256
    if n <= tk:
        np_ = _round_up(n, 32)       # sublane / int8-tile friendly single block
        return np_, np_, np_
    np_ = _round_up(n, tk)           # tk is a multiple of tm
    return np_, tm, tk


def _compiler_params(dims, vmem_bytes):
    """VMEM limit from actual buffer sizes, capped by device capacity."""
    cap = _vmem_capacity_bytes()
    limit = min((cap * 3) // 4, max(32 << 20, int(vmem_bytes) + (4 << 20)))
    return pltpu.CompilerParams(
        dimension_semantics=dims, vmem_limit_bytes=int(limit))


# ----------------------------------------------------------------------------
# Kernels
# ----------------------------------------------------------------------------
def _linear_norm_kernel(x_ref, w_ref, b_ref, h_ref, hn_ref):
    """h = x @ w + b (lin1) with F.normalize fused into the epilogue."""
    y = jnp.dot(x_ref[...].astype(_MXU_DTYPE), w_ref[...].astype(_MXU_DTYPE),
                preferred_element_type=jnp.float32) + b_ref[...]
    h_ref[...] = y.astype(h_ref.dtype)
    ssq = jnp.sum(y * y, axis=-1, keepdims=True)
    hn_ref[...] = (y * lax.rsqrt(jnp.maximum(ssq, 1e-24))).astype(hn_ref.dtype)


def _prop_kernel(beta_ref, q_ref, k_ref, v_ref, adj_ref, *refs,
                 emit_norm, hreal):
    """One AGNNConv propagation, flash-attention style.

    Grid axis 0: target-node row blocks (parallel).
    Grid axis 1: source-node key blocks (arbitrary; online-softmax reduction).

      s   = <beta * hn_i, hn_j>          (MXU, bf16 operands, f32 accumulate)
      p   = exp(s - m) * adj             (adj: int8 0/1; zero on non-edges)
      out = softmax_over_edges(s) @ h    (m/l/acc kept in VMEM scratch)

    The running max m is taken over the *unmasked* logits (an upper bound of
    the edge max); softmax is shift-invariant so this is exact, and it stays
    NaN-free even for rows/blocks with no edges (p is simply all zero there).
    """
    if emit_norm:
        h_out_ref, hn_out_ref, m_sc, l_sc, acc_sc = refs
    else:
        out_ref, m_sc, l_sc, acc_sc = refs

    kj = pl.program_id(1)

    @pl.when(kj == 0)
    def _():
        m_sc[...] = jnp.full_like(m_sc, -1e30)
        l_sc[...] = jnp.zeros_like(l_sc)
        acc_sc[...] = jnp.zeros_like(acc_sc)

    # Fold beta into the (tm, Hp) query block (cheap) rather than scaling the
    # (tm, tk) logit matrix every step.
    beta = beta_ref[0]
    q = (q_ref[...] * beta).astype(_MXU_DTYPE)

    # Attention logits: contract both operands on the feature axis (no .T /
    # relayout of the key block before the MXU).
    s = lax.dot_general(
        q, k_ref[...].astype(_MXU_DTYPE),
        dimension_numbers=(((1,), (1,)), ((), ())),
        preferred_element_type=jnp.float32)                # [tm, tk]

    m_prev = m_sc[...]
    m_new = jnp.maximum(m_prev, jnp.max(s, axis=-1, keepdims=True))
    alpha = jnp.exp(m_prev - m_new)
    p = jnp.exp(s - m_new) * adj_ref[...].astype(jnp.float32)  # zero non-edges
    l_sc[...] = alpha * l_sc[...] + jnp.sum(p, axis=-1, keepdims=True)
    acc_sc[...] = alpha * acc_sc[...] + jnp.dot(
        p.astype(_MXU_DTYPE), v_ref[...].astype(_MXU_DTYPE),
        preferred_element_type=jnp.float32)
    m_sc[...] = m_new

    @pl.when(kj == pl.num_programs(1) - 1)
    def _():
        out = acc_sc[...] * pl.reciprocal(l_sc[...], approx=True)
        if emit_norm:
            # prop1: emit both h and normalize(h) for the next layer (fused).
            h_out_ref[...] = out.astype(h_out_ref.dtype)
            ssq = jnp.sum(out * out, axis=-1, keepdims=True)
            hn_out_ref[...] = (
                out * lax.rsqrt(jnp.maximum(ssq, 1e-24))).astype(hn_out_ref.dtype)
        else:
            # prop2: fused final log_softmax(dim=1), restricted to the REAL
            # feature columns (padded columns are masked then sliced off).
            if hreal < out.shape[-1]:
                col = lax.broadcasted_iota(jnp.int32, out.shape, 1)
                out = jnp.where(col < hreal, out, -1e30)
            mz = jnp.max(out, axis=-1, keepdims=True)
            z = out - mz
            out_ref[...] = (
                z - jnp.log(jnp.sum(jnp.exp(z), axis=-1, keepdims=True))
            ).astype(out_ref.dtype)


# ----------------------------------------------------------------------------
# pallas_call wrappers
# ----------------------------------------------------------------------------
def _linear_norm(xp, w, b, tm):
    Np, Fp = xp.shape
    Hp = w.shape[1]
    esz = jnp.dtype(_STORE_DTYPE).itemsize
    vmem_bytes = (2 * tm * Fp * 4              # x blocks (double-buffered)
                  + 2 * (Fp * Hp + Hp) * 4     # w, b (constant-index)
                  + 2 * 2 * tm * Hp * esz      # h / hn output blocks
                  + 2 * tm * Hp * 4)           # f32 temporaries
    cost = pl.CostEstimate(
        flops=int(2 * Np * Fp * Hp + 6 * Np * Hp),
        transcendentals=int(Np),
        bytes_accessed=int(Np * Fp * 4 + Fp * Hp * 4 + 2 * Np * Hp * esz),
    )
    return pl.pallas_call(
        _linear_norm_kernel,
        out_shape=(jax.ShapeDtypeStruct((Np, Hp), _STORE_DTYPE),
                   jax.ShapeDtypeStruct((Np, Hp), _STORE_DTYPE)),
        grid=(Np // tm,),
        in_specs=[
            pl.BlockSpec((tm, Fp), lambda i: (i, 0)),   # x rows
            pl.BlockSpec((Fp, Hp), lambda i: (0, 0)),   # w1 (constant index)
            pl.BlockSpec((1, Hp), lambda i: (0, 0)),    # b1 (constant index)
        ],
        out_specs=(pl.BlockSpec((tm, Hp), lambda i: (i, 0)),   # h  (bf16)
                   pl.BlockSpec((tm, Hp), lambda i: (i, 0))),  # hn (bf16)
        compiler_params=_compiler_params(("parallel",), vmem_bytes),
        cost_estimate=cost,
    )(xp, w, b.reshape(1, Hp))


def _prop(beta, hn, h, adj, tm, tk, hreal, emit_norm):
    Np, Hp = h.shape
    esz = jnp.dtype(_STORE_DTYPE).itemsize
    n_row_blocks = Np // tm

    if emit_norm:
        out_shape = (jax.ShapeDtypeStruct((Np, Hp), _STORE_DTYPE),
                     jax.ShapeDtypeStruct((Np, Hp), _STORE_DTYPE))
        out_specs = (pl.BlockSpec((tm, Hp), lambda i, j: (i, 0)),
                     pl.BlockSpec((tm, Hp), lambda i, j: (i, 0)))
        out_blk_bytes = 2 * 2 * tm * Hp * esz
        out_hbm_bytes = 2 * Np * Hp * esz
    else:
        out_shape = jax.ShapeDtypeStruct((Np, Hp), jnp.float32)
        out_specs = pl.BlockSpec((tm, Hp), lambda i, j: (i, 0))
        out_blk_bytes = 2 * tm * Hp * 4
        out_hbm_bytes = Np * Hp * 4

    vmem_bytes = (
        2 * tm * Hp * esz                 # query block
        + 2 * 2 * tk * Hp * esz           # key / value blocks (double-buffered)
        + 2 * tm * tk * 1                 # int8 adjacency block
        + out_blk_bytes
        + (2 * tm * 128 + tm * Hp) * 4    # m/l (lane-padded) + acc scratch
        + 3 * tm * tk * 4                 # s / p / live f32 temporaries
    )
    cost = pl.CostEstimate(
        flops=int(4 * Np * Np * Hp + 8 * Np * Np),
        transcendentals=int(Np * Np + Np * Hp),
        bytes_accessed=int(Np * Hp * esz                        # queries
                           + 2 * n_row_blocks * Np * Hp * esz   # k/v re-stream
                           + Np * Np                            # int8 adjacency
                           + out_hbm_bytes),
    )
    kernel = functools.partial(_prop_kernel, emit_norm=emit_norm, hreal=hreal)
    return pl.pallas_call(
        kernel,
        out_shape=out_shape,
        grid=(Np // tm, Np // tk),
        in_specs=[
            pl.BlockSpec(memory_space=pltpu.MemorySpace.SMEM),   # beta scalar
            pl.BlockSpec((tm, Hp), lambda i, j: (i, 0)),         # hn query rows
            pl.BlockSpec((tk, Hp), lambda i, j: (j, 0)),         # hn key block
            pl.BlockSpec((tk, Hp), lambda i, j: (j, 0)),         # h value block
            pl.BlockSpec((tm, tk), lambda i, j: (i, j)),         # int8 adjacency
        ],
        out_specs=out_specs,
        scratch_shapes=[pltpu.VMEM((tm, 1), jnp.float32),    # running max  m
                        pltpu.VMEM((tm, 1), jnp.float32),    # running sum  l
                        pltpu.VMEM((tm, Hp), jnp.float32)],  # output accum
        compiler_params=_compiler_params(("parallel", "arbitrary"), vmem_bytes),
        cost_estimate=cost,
    )(beta, hn, hn, h, adj)


def agnnnet_forward(x, edge_index, w1, b1, betas):
    """x: [N, F] f32; edge_index: [2, E] int32 (row0 = source j, row1 = target i)."""
    N, F = x.shape
    H = w1.shape[1]
    Np, tm, tk = _choose_tiles(N)
    Fp = _round_up(F, 128)
    Hp = _round_up(H, 128)

    # One-time lane-dense padding (zeros do not change lin1/normalize/prop).
    xp = jnp.zeros((Np, Fp), jnp.float32).at[:N, :F].set(x)
    w1p = jnp.zeros((Fp, Hp), jnp.float32).at[:F, :H].set(w1)
    b1p = jnp.zeros((Hp,), jnp.float32).at[:H].set(b1)

    # Dense 0/1 adjacency built directly in int8.  Self-loops on the full
    # padded diagonal keep padded rows finite; they never affect real rows
    # because adj[real, padded] == 0.
    # TODO(synk): cache adj across forward calls / switch to a CSR edge-list
    # gather (PrefetchScalarGridSpec) for genuinely sparse graphs at scale.
    adj = jnp.zeros((Np, Np), jnp.int8)
    adj = adj.at[edge_index[1], edge_index[0]].set(1)
    diag = jnp.arange(Np)
    adj = adj.at[diag, diag].set(1)

    # dropout(x) is identity in eval mode.  lin1 with fused F.normalize.
    h0, hn0 = _linear_norm(xp, w1p, b1p, tm)

    # prop1 (AGNNConv): also emits normalize(h1) for the next layer.
    h1, hn1 = _prop(betas[0:1], hn0, h0, adj, tm, tk, hreal=H, emit_norm=True)

    # prop2 (AGNNConv) with the final log_softmax(dim=1) fused in.
    out = _prop(betas[1:2], hn1, h1, adj, tm, tk, hreal=H, emit_norm=False)

    # self.layers is empty -> hidden-layer / SiLU / dropout loop runs 0 times.
    return out[:N, :H]


# ----------------------------------------------------------------------------
# Pure-JAX reference (f32)
# ----------------------------------------------------------------------------
def _reference(x, edge_index, w1, b1, betas):
    N = x.shape[0]
    adj = jnp.zeros((N, N), jnp.float32)
    adj = adj.at[edge_index[1], edge_index[0]].set(1.0)
    adj = adj.at[jnp.arange(N), jnp.arange(N)].set(1.0)

    h = x @ w1 + b1[None, :]

    def prop(h, beta):
        hn = h / jnp.maximum(jnp.linalg.norm(h, axis=-1, keepdims=True), 1e-12)
        s = beta * (hn @ hn.T)
        s = jnp.where(adj > 0, s, -jnp.inf)
        p = jax.nn.softmax(s, axis=-1)
        return p @ h

    h = prop(h, betas[0])
    h = prop(h, betas[1])
    return jax.nn.log_softmax(h, axis=1)


if __name__ == "__main__":
    # Small, deterministic setup: N=8 nodes, num_features=16, width=[32]
    N, F, H = 8, 16, 32
    key = jax.random.PRNGKey(0)
    kx, kw, kb = jax.random.split(key, 3)

    x = jax.random.normal(kx, (N, F), jnp.float32)

    # lin1 parameters (PyTorch stores [out, in]; pass transposed [F, H]).
    bound = 1.0 / (F ** 0.5)
    w1 = jax.random.uniform(kw, (F, H), jnp.float32, -bound, bound)
    b1 = jax.random.uniform(kb, (H,), jnp.float32, -bound, bound)

    # AGNNConv betas: reset_parameters() fills with 1.0.
    betas = jnp.ones((2,), jnp.float32)

    # Deterministic graph: bidirectional ring.
    src = jnp.arange(N, dtype=jnp.int32)
    dst = (src + 1) % N
    edge_index = jnp.concatenate(
        [jnp.stack([src, dst]), jnp.stack([dst, src])], axis=1
    )  # [2, 2N]

    out = agnnnet_forward(x, edge_index, w1, b1, betas)
    out = jax.block_until_ready(out)

    ref = _reference(x, edge_index, w1, b1, betas)
    assert out.shape == (N, H)
    # bf16 storage / bf16 MXU operands: compare against the f32 reference with
    # a correspondingly relaxed tolerance (set _MXU/_STORE dtypes to f32 to
    # recover ~1e-4 agreement).
    assert jnp.allclose(out, ref, atol=5e-2, rtol=5e-2), "mismatch vs reference"

    print("KERNEL_OK")
</pallas_src>

<mosaic_0001>
module attributes {stable_mosaic.version = 11 : i64} {
  func.func @_linear_norm_kernel(%arg0: i32, %arg1: memref<32x128xf32, #tpu.memory_space<vmem>>, %arg2: memref<128x128xf32, #tpu.memory_space<vmem>>, %arg3: memref<1x128xf32, #tpu.memory_space<vmem>>, %arg4: memref<32x128xbf16, #tpu.memory_space<vmem>>, %arg5: memref<32x128xbf16, #tpu.memory_space<vmem>>) attributes {dimension_semantics = [#tpu.dimension_semantics<parallel>], iteration_bounds = array<i64: 1>, scalar_prefetch = 0 : i64, scratch_operands = 0 : i64, tpu.core_type = #tpu.core_type<tc>, window_params = [{transform_indices = @transform_0, window_bounds = array<i64: 32, 128>}, {pipeline_mode = #tpu.pipeline_mode<synchronous>, transform_indices = @transform_1, window_bounds = array<i64: 128, 128>}, {pipeline_mode = #tpu.pipeline_mode<synchronous>, transform_indices = @transform_2, window_bounds = array<i64: 1, 128>}, {transform_indices = @transform_3, window_bounds = array<i64: 32, 128>}, {transform_indices = @transform_4, window_bounds = array<i64: 32, 128>}]} {
    %c0 = arith.constant 0 : index
    %c0_0 = arith.constant 0 : index
    %0 = vector.load %arg1[%c0, %c0_0] : memref<32x128xf32, #tpu.memory_space<vmem>>, vector<32x128xf32>
    %1 = arith.truncf %0 : vector<32x128xf32> to vector<32x128xbf16>
    %c0_1 = arith.constant 0 : index
    %c0_2 = arith.constant 0 : index
    %2 = vector.load %arg2[%c0_1, %c0_2] : memref<128x128xf32, #tpu.memory_space<vmem>>, vector<128x128xf32>
    %3 = arith.truncf %2 : vector<128x128xf32> to vector<128x128xbf16>
    %cst = arith.constant dense<0.000000e+00> : vector<32x128xf32>
    %4 = tpu.matmul %1, %3, %cst {dimension_numbers = #tpu.dot_dimension_numbers<[1], [0], [0], [1], [0, 0, 1, 1], [], []>} : vector<32x128xbf16>, vector<128x128xbf16>, vector<32x128xf32> -> vector<32x128xf32>
    %c0_3 = arith.constant 0 : index
    %c0_4 = arith.constant 0 : index
    %5 = vector.load %arg3[%c0_3, %c0_4] : memref<1x128xf32, #tpu.memory_space<vmem>>, vector<1x128xf32>
    %6 = vector.broadcast %5 : vector<1x128xf32> to vector<32x128xf32>
    %7 = arith.addf %4, %6 : vector<32x128xf32>
    %8 = arith.truncf %7 : vector<32x128xf32> to vector<32x128xbf16>
    %c0_5 = arith.constant 0 : index
    %c0_6 = arith.constant 0 : index
    %9 = vector.load %arg4[%c0_5, %c0_6] : memref<32x128xbf16, #tpu.memory_space<vmem>>, vector<32x128xbf16>
    tpu.vector_store %arg4[%c0_5, %c0_6], %8 {strides = array<i32>} : memref<32x128xbf16, #tpu.memory_space<vmem>>, vector<32x128xbf16>,
    %10 = arith.mulf %7, %7 : vector<32x128xf32>
    %cst_7 = arith.constant dense<0.000000e+00> : vector<32xf32>
    %11 = vector.multi_reduction <add>, %10, %cst_7 [1] : vector<32x128xf32> to vector<32xf32>
    %12 = vector.shape_cast %11 : vector<32xf32> to vector<32x1xf32>
    %cst_8 = arith.constant 1.000000e-24 : f32
    %13 = vector.broadcast %cst_8 : f32 to vector<32x1xf32>
    %14 = arith.maximumf %12, %13 : vector<32x1xf32>
    %15 = math.rsqrt %14 : vector<32x1xf32>
    %16 = vector.broadcast %15 : vector<32x1xf32> to vector<32x128xf32>
    %17 = arith.mulf %7, %16 : vector<32x128xf32>
    %18 = arith.truncf %17 : vector<32x128xf32> to vector<32x128xbf16>
    %c0_9 = arith.constant 0 : index
    %c0_10 = arith.constant 0 : index
    %19 = vector.load %arg5[%c0_9, %c0_10] : memref<32x128xbf16, #tpu.memory_space<vmem>>, vector<32x128xbf16>
    tpu.vector_store %arg5[%c0_9, %c0_10], %18 {strides = array<i32>} : memref<32x128xbf16, #tpu.memory_space<vmem>>, vector<32x128xbf16>,
    return
  }
  func.func @transform_0(%arg0: i32) -> (i32, i32) {
    %c0_i32 = arith.constant 0 : i32
    %c0_i32_0 = arith.constant 0 : i32
    return %arg0, %c0_i32 : i32, i32
  }
  func.func @transform_1(%arg0: i32) -> (i32, i32) {
    %c0_i32 = arith.constant 0 : i32
    %c0_i32_0 = arith.constant 0 : i32
    %c0_i32_1 = arith.constant 0 : i32
    return %c0_i32, %c0_i32_0 : i32, i32
  }
  func.func @transform_2(%arg0: i32) -> (i32, i32) {
    %c0_i32 = arith.constant 0 : i32
    %c0_i32_0 = arith.constant 0 : i32
    %c0_i32_1 = arith.constant 0 : i32
    return %c0_i32, %c0_i32_0 : i32, i32
  }
  func.func @transform_3(%arg0: i32) -> (i32, i32) {
    %c0_i32 = arith.constant 0 : i32
    %c0_i32_0 = arith.constant 0 : i32
    return %arg0, %c0_i32 : i32, i32
  }
  func.func @transform_4(%arg0: i32) -> (i32, i32) {
    %c0_i32 = arith.constant 0 : i32
    %c0_i32_0 = arith.constant 0 : i32
    return %arg0, %c0_i32 : i32, i32
  }
}

</mosaic_0001>

<bundles_post_ra>
// kernel: tpu_custom_call.1
= control target key start
LH: loop header
LB: loop body
LE: loop exit
PB: predicated region body
PF: predicated region fallthrough
CT: control target
= control target key end

     0   :  { %10 = vsyncpa [#allocation3], 0  ;;  %s458_s0 = inlined_call_operand.hbm [shape: f32[32,128], index: 0, kind: input, shape index: {}]   ;;  %s459_s1 = inlined_call_operand.hbm [shape: f32[128,128], index: 1, kind: input, shape index: {}]   ;;  %s460_s2 = inlined_call_operand.vmem [shape: f32[1,128], index: 2, kind: input, shape index: {}]   ;;  %s461_s3 = inlined_call_operand.hbm [shape: bf16[32,128], index: 3, kind: output, shape index: {0}]   ;;  %s462_s4 = inlined_call_operand.hbm [shape: bf16[32,128], index: 4, kind: output, shape index: {1}]  }
   0x1   :  { %11 = vsyncpa [#allocation6], 0 }
   0x2   :  { %12 = vsyncpa [#allocation4], 0 }
   0x3   :  { %13 = vsyncpa [#allocation9], 0  ;;  %s404_s15 = smov [#allocation2]  }
   0x4   :  { %s19_s16 = sshll.u32 %s404_s15, 4  ;;  %s20_s16 = int_to_ptr.vmem [resolvable:$true] %s19_s16 }
   0x5   :  { %s324_s17 = scalar_lea.vmem %s20_s16, 512  ;;  %p329_p1 = scmp.lt.s32.totalorder %s20_s16, %s20_s16 }
   0x6   :  { %p325_p0 = scmp.ne.s32.totalorder %s20_s16, %s324_s17  ;;  %p330_p2 = scmp.lt.s32.totalorder %s324_s17, %s324_s17 }
   0x8   :  { %p331_p3 = por %p330_p2, %p329_p1 }
   0xa   :  { %p332_p4 = pnand %p331_p3, %p325_p0 }
   0xc   :  { %335 = shalt.err (!%p332_p4)
}
   0xd   :  { %s405_s18 = smov 128   ;;  %s406_s19 = smov 8  }
   0xe   :  { %25 = dma.hbm_to_vmem [thread:$0]  %s458_s0, 512, %s20_s16, [#allocation3], %s405_s18, %s405_s18, %s406_s19  }
   0xf   :  { %s407_s22 = smov [#allocation5]  }
  0x10   :  { %s31_s23 = sshll.u32 %s407_s22, 4  ;;  %s32_s23 = int_to_ptr.vmem [resolvable:$true] %s31_s23 }
  0x11   :  { %s344_s24 = scalar_lea.vmem %s32_s23, 2048  ;;  %p349_p6 = scmp.lt.s32.totalorder %s32_s23, %s32_s23 }
  0x12   :  { %p345_p5 = scmp.ne.s32.totalorder %s32_s23, %s344_s24  ;;  %p350_p7 = scmp.lt.s32.totalorder %s344_s24, %s344_s24 }
  0x14   :  { %p351_p8 = por %p350_p7, %p349_p6 }
  0x16   :  { %p352_p9 = pnand %p351_p8, %p345_p5 }
  0x18   :  { %355 = shalt.err (!%p352_p9)
}
  0x19   :  { %37 = dma.hbm_to_vmem [thread:$0]  %s459_s1, 2048, %s32_s23, [#allocation6], %s405_s18, %s405_s18, %s406_s19  }
  0x1a   :  { %396 = dma.done.wait [#allocation3], 512  }
  0x1b   :  { %397 = vsyncadd [#allocation3], 4294966784 }
  0x1c   :  { %398 = dma.done.wait [#allocation6], 2048  }
  0x1d   :  { %399 = vsyncadd [#allocation6], 4294965248  ;;  %v67_v0 = vld [vmem:[#allocation5 + $0x70] sm:$0xff]  ;;  %v68_v1 = vld [vmem:[#allocation5 + $0x78] sm:$0xff] }
  0x1e   :  { %v65_v2 = vld [vmem:[#allocation5 + $0x60] sm:$0xff]  ;;  %v76_v3 = vpack.c.bf16 %v68_v1, %v67_v0  ;;  %v66_v4 = vld [vmem:[#allocation5 + $0x68] sm:$0xff]  ;;  %v63_v6 = vld [vmem:[#allocation5 + $0x50] sm:$0xff] }
  0x1f   :  { %v75_v5 = vpack.c.bf16 %v66_v4, %v65_v2  ;;  %v64_v7 = vld [vmem:[#allocation5 + $0x58] sm:$0xff]  ;;  %v47_v9 = vld [vmem:[#allocation2] sm:$0xff]  ;;  %v48_v10 = vld [vmem:[#allocation2 + $0x8] sm:$0xff] }
  0x20   :  { %280 = vmatprep.subr.bf16.mxu0 %v76_v3  ;;  %v74_v8 = vpack.c.bf16 %v64_v7, %v63_v6  ;;  %v61_v11 = vld [vmem:[#allocation5 + $0x40] sm:$0xff]  ;;  %v62_v12 = vld [vmem:[#allocation5 + $0x48] sm:$0xff]  ;;  %v51_v13 = vpack.c.bf16 %v48_v10, %v47_v9  ;;  %v59_v15 = vld [vmem:[#allocation5 + $0x30] sm:$0xff] }
  0x21   :  { %281 = vmatpush3.bf16.msra.mxu0 %v76_v3  ;;  %v73_v14 = vpack.c.bf16 %v62_v12, %v61_v11  ;;  %v60_v16 = vld [vmem:[#allocation5 + $0x38] sm:$0xff]  ;;  %v57_v18 = vld [vmem:[#allocation5 + $0x20] sm:$0xff]  ;;  %v58_v19 = vld [vmem:[#allocation5 + $0x28] sm:$0xff] }
  0x22   :  { %282 = vmatprep.subr.bf16.mxu0 %v75_v5  ;;  %296 = vmatprep.mubr.bf16.mxu0 %v51_v13  ;;  %v72_v17 = vpack.c.bf16 %v60_v16, %v59_v15  ;;  %v71_v20 = vpack.c.bf16 %v58_v19, %v57_v18  ;;  %v55_v21 = vld [vmem:[#allocation5 + $0x10] sm:$0xff]  ;;  %v56_v22 = vld [vmem:[#allocation5 + $0x18] sm:$0xff]  ;;  %v53_v24 = vld [vmem:[#allocation5] sm:$0xff] }
  0x23   :  { %v70_v23 = vpack.c.bf16 %v56_v22, %v55_v21  ;;  %v54_v25 = vld [vmem:[#allocation5 + $0x8] sm:$0xff]  ;;  %v49_v27 = vld [vmem:[#allocation2 + $0x10] sm:$0xff]  ;;  %v50_v28 = vld [vmem:[#allocation2 + $0x18] sm:$0xff] }
  0x24   :  { %v69_v26 = vpack.c.bf16 %v54_v25, %v53_v24  ;;  %v52_v29 = vpack.c.bf16 %v50_v28, %v49_v27  ;;  %v231_v30 = vld [vmem:[%s460_s2] ss:$0 sm:$0xff]  ;;  %s408_s2 = smov [#allocation7]  }
  0x25   :  { %283 = vmatpush3.bf16.msra.mxu0 %v75_v5  ;;  %s202_s27 = sshll.u32 %s408_s2, 4  ;;  %s203_s27 = int_to_ptr.vmem [resolvable:$true] %s202_s27 }
  0x26   :  { %284 = vmatprep.subr.bf16.mxu0 %v74_v8  ;;  %s356_s28 = scalar_lea.vmem %s203_s27, 256  ;;  %p361_p11 = scmp.lt.s32.totalorder %s203_s27, %s203_s27 }
  0x27   :  { %p357_p10 = scmp.ne.s32.totalorder %s203_s27, %s356_s28  ;;  %p362_p12 = scmp.lt.s32.totalorder %s356_s28, %s356_s28 }
  0x29   :  { %285 = vmatpush3.bf16.msra.mxu0 %v74_v8  ;;  %p363_p13 = por %p362_p12, %p361_p11 }
  0x2a   :  { %286 = vmatprep.subr.bf16.mxu0 %v73_v14 }
  0x2b   :  { %p364_p0 = pnand %p363_p13, %p357_p10 }
  0x2d   :  { %287 = vmatpush3.bf16.msra.mxu0 %v73_v14 }
  0x2e   :  { %288 = vmatprep.subr.bf16.mxu0 %v72_v17 }
  0x31   :  { %289 = vmatpush3.bf16.msra.mxu0 %v72_v17 }
  0x32   :  { %290 = vmatprep.subr.bf16.mxu0 %v71_v20 }
  0x35   :  { %291 = vmatpush3.bf16.msra.mxu0 %v71_v20 }
  0x36   :  { %292 = vmatprep.subr.bf16.mxu0 %v70_v23 }
  0x39   :  { %293 = vmatpush3.bf16.msra.mxu0 %v70_v23 }
  0x3a   :  { %294 = vmatprep.subr.bf16.mxu0 %v69_v26 }
  0x3d   :  { %295 = vmatpush3.bf16.msra.mxu0 %v69_v26 }
  0x40   :  { %297 = vmatmul.mubr.bf16.vlgmr.msra.gmra.mxu0 %v52_v29 }
 0x100   :  { %v298_v31 = vpop.f32.mrf.mxu0 }
 0x101   :  { %v127_v32 = vadd.f32 %v298_v31, %v231_v30 }
 0x102   :  { %v118_v33 = vpop.f32.mrf.mxu0 }
 0x103   :  { %v119_v34 = vadd.f32 %v231_v30, %v118_v33  ;;  %v155_v35 = vmul.f32 %v127_v32, %v127_v32 }
 0x104   :  { %v299_v36 = vpop.f32.mrf.mxu0 }
 0x105   :  { %v130_v37 = vadd.f32 %v299_v36, %v231_v30  ;;  %161 = vadd.xlane.f32.xlu1 %v155_v35  ;;  %v153_v38 = vmul.f32 %v119_v34, %v119_v34 }
 0x106   :  { %v121_v39 = vpop.f32.mrf.mxu0 }
 0x107   :  { %v256_v40 = vpack.c.bf16 %v130_v37, %v127_v32  ;;  %v122_v41 = vadd.f32 %v231_v30, %v121_v39  ;;  %157 = vadd.xlane.f32.xlu0 %v153_v38  ;;  %v156_v42 = vmul.f32 %v130_v37, %v130_v37 }
 0x109   :  { %268 = vst [vmem:[#allocation7 + $0x8] sm:$0xff] %v256_v40   ;;  %v251_v43 = vpack.c.bf16 %v122_v41, %v119_v34  ;;  %163 = vadd.xlane.f32.xlu1 %v156_v42  ;;  %v154_v44 = vmul.f32 %v122_v41, %v122_v41 }
 0x10b   :  { %252 = vst [vmem:[#allocation7] sm:$0xff] %v251_v43   ;;  %159 = vadd.xlane.f32.xlu0 %v154_v44 }
 0x10c   :  { %367 = shalt.err (!%p364_p0)
}
 0x10d   :  { %s409_s29 = smov 64   ;;  %s410_s30 = smov 4  }
 0x10e   :  { %208 = dma.vmem_to_hbm [thread:$0]  %s203_s27, 256, %s461_s3, [#allocation4], %s409_s29, %s409_s29, %s410_s30  }
 0x10f   :  { %s411_s7 = smov [#allocation8]  }
 0x110   :  { %s214_s3 = sshll.u32 %s411_s7, 4  ;;  %s215_s3 = int_to_ptr.vmem [resolvable:$true] %s214_s3 }
 0x111   :  { %s376_s8 = scalar_lea.vmem %s215_s3, 256  ;;  %p381_p2 = scmp.lt.s32.totalorder %s215_s3, %s215_s3 }
 0x112   :  { %p377_p1 = scmp.ne.s32.totalorder %s215_s3, %s376_s8  ;;  %p382_p3 = scmp.lt.s32.totalorder %s376_s8, %s376_s8 }
 0x114   :  { %p383_p4 = por %p382_p3, %p381_p2 }
 0x116   :  { %p384_p5 = pnand %p383_p4, %p377_p1 }
 0x18e   :  { %v162_v45 = vpop.xlane.xlu1 %161 }
 0x18f   :  { %v167_v46 = vmax.f32 %v162_v45, 1e-24 }
 0x190   :  { %v158_v47 = vpop.xlane.xlu0 %157 }
 0x191   :  { %v165_v48 = vmax.f32 %v158_v47, 1e-24  ;;  %308 = vrsqrt.f32 %v167_v46 }
 0x192   :  { %v164_v49 = vpop.xlane.xlu1 %163 }
 0x193   :  { %v168_v50 = vmax.f32 %v164_v49, 1e-24  ;;  %310 = vrsqrt.f32 %v165_v48 }
 0x194   :  { %v160_v51 = vpop.xlane.xlu0 %159 }
 0x195   :  { %312 = vrsqrt.f32 %v168_v50  ;;  %v166_v52 = vmax.f32 %v160_v51, 1e-24 }
 0x197   :  { %314 = vrsqrt.f32 %v166_v52 }
 0x19e   :  { %v309_v53 = vpop.eup %308 }
 0x19f   :  { %v175_v56 = vmul.f32 %v309_v53, %v127_v32 }
 0x1a0   :  { %v311_v54 = vpop.eup %310 }
 0x1a1   :  { %v173_v59 = vmul.f32 %v311_v54, %v119_v34 }
 0x1a2   :  { %v313_v55 = vpop.eup %312 }
 0x1a3   :  { %v176_v57 = vmul.f32 %v313_v55, %v130_v37 }
 0x1a4   :  { %v315_v58 = vpop.eup %314 }
 0x1a5   :  { %v174_v60 = vmul.f32 %v315_v58, %v122_v41  ;;  %v266_v61 = vpack.c.bf16 %v176_v57, %v175_v56 }
 0x1a7   :  { %v261_v62 = vpack.c.bf16 %v174_v60, %v173_v59  ;;  %269 = vst [vmem:[#allocation8 + $0x8] sm:$0xff] %v266_v61  }
 0x1a9   :  { %262 = vst [vmem:[#allocation8] sm:$0xff] %v261_v62  }
 0x1aa   :  { %387 = shalt.err (!%p384_p5)
}
 0x1ab   :  { %220 = dma.vmem_to_hbm [thread:$0]  %s215_s3, 256, %s462_s4, [#allocation9], %s409_s29, %s409_s29, %s410_s30  }
 0x1ac   :  { %400 = dma.done.wait [#allocation4], 256  }
 0x1ad   :  { %401 = vsyncadd [#allocation4], 4294967040 }
 0x1ae   :  { %402 = dma.done.wait [#allocation9], 256  }
 0x1af   :  { %403 = vsyncadd [#allocation9], 4294967040 }
 0x1b0   :  { %227 = vsyncpa [#allocation3], 1 }
 0x1b1   :  { %228 = vsyncpa [#allocation6], 1 }
 0x1b2   :  { %229 = vsyncpa [#allocation4], 1 }
 0x1b3   :  { %230 = vsyncpa [#allocation9], 1 }

</bundles_post_ra>
